<compile_context>
chip_gen: v7x
topology: tpu7x:2x2x1
jax: 0.10.0
libtpu: 0.0.40
codegen_flags: <defaults>
</compile_context>

<pallas_src>
import functools

import jax
import jax.numpy as jnp
from jax.experimental import pallas as pl
from jax.experimental.pallas import tpu as pltpu


def _round_up(v, m):
    return (v + m - 1) // m * m


def _lora_kernel(x_ref, a_ref, b_ref, o_ref, xa_ref, *, alpha, mxu_dtype):
    """Grid: (i over M row-tiles, k over in_dim chunks).

    k MUST stay the innermost (fastest-varying) grid axis: the xa scratch is
    accumulated over k for a fixed i and the output block index (i, 0) is
    constant across k (accumulator pattern).  Reordering the grid would
    silently reuse stale xa.
    """
    k = pl.program_id(1)

    @pl.when(k == 0)
    def _():
        xa_ref[...] = jnp.zeros_like(xa_ref)

    # Accumulate (tm, tk) @ (tk, rank) into the f32 scratch.
    xa_ref[...] += jnp.dot(x_ref[...], a_ref[...],
                           preferred_element_type=jnp.float32)

    @pl.when(k == pl.num_programs(1) - 1)
    def _():
        # alpha applied once on the tiny (tm, rank) intermediate; cast to the
        # MXU-friendly dtype (bf16 when B is bf16) for the second matmul while
        # keeping f32 accumulation.
        xa = (alpha * xa_ref[...]).astype(mxu_dtype)
        out = jnp.dot(xa, b_ref[...], preferred_element_type=jnp.float32)
        o_ref[...] = out.astype(o_ref.dtype)


def lora_layer_forward(x, A, B, alpha, *, tm_cap=512, tk_cap=1024,
                       vmem_budget=24 * 1024 * 1024):
    """out = alpha * (x @ A @ B); x: (..., in_dim), A: (in_dim, rank), B: (rank, out_dim)."""
    in_dim, rank = A.shape
    rank_b, out_dim = B.shape
    assert rank_b == rank and x.shape[-1] == in_dim

    lead_shape = x.shape[:-1]
    x2d = x.reshape(-1, in_dim)            # keep caller dtype (bf16 friendly)
    M = x2d.shape[0]

    x_item = jnp.dtype(x2d.dtype).itemsize
    a_item = jnp.dtype(A.dtype).itemsize
    b_item = jnp.dtype(B.dtype).itemsize
    out_dtype = x2d.dtype
    o_item = x_item

    # --- contraction (in_dim) chunking -------------------------------------
    # Only chunk when the chunk size divides in_dim exactly: a ragged edge on
    # the contraction dim would read undefined padding and corrupt valid rows.
    if in_dim <= tk_cap:
        tk = in_dim
    else:
        tk = in_dim
        for cand in range(tk_cap - tk_cap % 128, 127, -128):
            if in_dim % cand == 0:
                tk = cand
                break
    n_k = in_dim // tk

    # --- row tile (tm) sizing against the VMEM budget -----------------------
    # Double-buffered consumers: x (2*tm*tk), A (2*tk*rank), output stripe
    # (2*tm*out_dim).  B is whole-resident (constant block index) but counted
    # twice to stay conservative.  xa scratch is tm*rank f32.
    fixed = 2 * tk * rank * a_item + 2 * rank * out_dim * b_item
    per_row = 2 * tk * x_item + 2 * out_dim * o_item + rank * 4
    tm = min(tm_cap, max(vmem_budget - fixed, 0) // per_row)
    tm = max(8, (tm // 8) * 8)
    tm = min(tm, _round_up(M, 8))
    # Keep >= 2 row tiles when possible so the "parallel" i axis can shard
    # across both TensorCores on v7x (harmless on single-TC v5e/v6e).
    if M > 8 and pl.cdiv(M, tm) == 1:
        tm = _round_up(pl.cdiv(M, 2), 8)
    # TODO(synk): for extreme out_dim where even tm=8 overflows the budget,
    # reintroduce a column (j) grid axis; typical LoRA shapes never hit this.

    grid = (pl.cdiv(M, tm), n_k)

    # Keep the second matmul on the fast MXU path when B is low precision.
    if jnp.issubdtype(B.dtype, jnp.floating) and b_item < 4:
        mxu_dtype = B.dtype
    else:
        mxu_dtype = jnp.float32

    flops = 2 * M * in_dim * rank + 2 * M * rank * out_dim
    bytes_accessed = (x2d.size * x_item + A.size * a_item
                      + B.size * b_item + M * out_dim * o_item)

    # NOTE: alpha is a static hyperparameter baked in at trace time.  If it
    # ever becomes a traced per-call value, pass it via a (1, 1) SMEM spec.
    kernel = functools.partial(_lora_kernel, alpha=float(alpha),
                               mxu_dtype=mxu_dtype)

    out = pl.pallas_call(
        kernel,
        out_shape=jax.ShapeDtypeStruct((M, out_dim), out_dtype),
        grid=grid,
        in_specs=[
            # x: (tm, tk) chunk; block index changes with both i and k.
            pl.BlockSpec((tm, tk), lambda i, k: (i, k)),
            # A: (tk, rank) chunk; block index changes only with k.
            pl.BlockSpec((tk, rank), lambda i, k: (k, 0)),
            # B: whole (rank, out_dim) matrix, VMEM-resident for the entire
            # grid (constant block index => DMA'd from HBM exactly once).
            pl.BlockSpec((rank, out_dim), lambda i, k: (0, 0)),
        ],
        # One lane-dense (tm, out_dim) output stripe per row tile; the block
        # index is constant across k (written only at the last k step).
        out_specs=pl.BlockSpec((tm, out_dim), lambda i, k: (i, 0)),
        scratch_shapes=[pltpu.VMEM((tm, rank), jnp.float32)],
        compiler_params=pltpu.CompilerParams(
            dimension_semantics=("parallel", "arbitrary"),
            vmem_limit_bytes=32 * 1024 * 1024,
        ),
        cost_estimate=pl.CostEstimate(
            flops=flops, transcendentals=0, bytes_accessed=bytes_accessed),
    )(x2d, A, B)

    return out.reshape(*lead_shape, out_dim)


if __name__ == "__main__":
    # Small deterministic shapes implied by the module:
    # batch=2, seq=8, in_dim=32, out_dim=32, rank=4, alpha=2.0
    batch, seq, in_dim, out_dim, rank = 2, 8, 32, 32, 4
    alpha = 2.0

    key = jax.random.PRNGKey(0)
    kx, ka, kb = jax.random.split(key, 3)

    x = jax.random.normal(kx, (batch, seq, in_dim), dtype=jnp.float32)
    # LoRA params. A ~ N(0,1)/sqrt(rank) as in the module; the module inits B
    # to zeros -- use small random values here so the path is exercised
    # numerically (the zero-B case is checked separately below).
    A = jax.random.normal(ka, (in_dim, rank), dtype=jnp.float32) * (1.0 / rank ** 0.5)
    B = jax.random.normal(kb, (rank, out_dim), dtype=jnp.float32) * 0.05

    out = jax.block_until_ready(lora_layer_forward(x, A, B, alpha))

    # Pure-JAX reference of the PyTorch forward: alpha * (x @ A @ B).
    ref = alpha * (x @ A @ B)

    assert out.shape == (batch, seq, out_dim)
    # Tolerance accommodates the MXU's reduced-precision passes for f32 matmul.
    err = float(jnp.max(jnp.abs(out - ref)))
    assert jnp.allclose(out, ref, atol=2e-2, rtol=2e-2), err

    # Zero-initialized B (the module's default init) must give exactly zeros.
    out0 = jax.block_until_ready(lora_layer_forward(x, A, jnp.zeros_like(B), alpha))
    assert jnp.allclose(out0, jnp.zeros_like(out0), atol=1e-6)

    print("KERNEL_OK")
</pallas_src>

<mosaic_0001>
module attributes {stable_mosaic.version = 11 : i64} {
  func.func @_lora_kernel(%arg0: i32, %arg1: i32, %arg2: memref<8x32xf32, #tpu.memory_space<vmem>>, %arg3: memref<32x4xf32, #tpu.memory_space<vmem>>, %arg4: memref<4x32xf32, #tpu.memory_space<vmem>>, %arg5: memref<8x32xf32, #tpu.memory_space<vmem>>, %arg6: memref<8x4xf32, #tpu.memory_space<vmem>>) attributes {dimension_semantics = [#tpu.dimension_semantics<parallel>, #tpu.dimension_semantics<arbitrary>], iteration_bounds = array<i64: 2, 1>, scalar_prefetch = 0 : i64, scratch_operands = 1 : i64, tpu.core_type = #tpu.core_type<tc>, window_params = [{transform_indices = @transform_0, window_bounds = array<i64: 8, 32>}, {transform_indices = @transform_1, window_bounds = array<i64: 32, 4>}, {pipeline_mode = #tpu.pipeline_mode<synchronous>, transform_indices = @transform_2, window_bounds = array<i64: 4, 32>}, {transform_indices = @transform_3, window_bounds = array<i64: 8, 32>}]} {
    %c0_i32 = arith.constant 0 : i32
    %0 = arith.cmpi eq, %arg1, %c0_i32 : i32
    %1 = arith.extui %0 : i1 to i32
    %c0_i32_0 = arith.constant 0 : i32
    %2 = arith.cmpi ne, %1, %c0_i32_0 : i32
    scf.if %2 {
      %cst_10 = arith.constant 0.000000e+00 : f32
      %12 = vector.broadcast %cst_10 : f32 to vector<8x4xf32>
      %c0_11 = arith.constant 0 : index
      %c0_12 = arith.constant 0 : index
      %13 = vector.load %arg6[%c0_11, %c0_12] : memref<8x4xf32, #tpu.memory_space<vmem>>, vector<8x4xf32>
      tpu.vector_store %arg6[%c0_11, %c0_12], %12 {strides = array<i32>} : memref<8x4xf32, #tpu.memory_space<vmem>>, vector<8x4xf32>,
    } else {
    }
    %c0 = arith.constant 0 : index
    %c0_1 = arith.constant 0 : index
    %3 = vector.load %arg6[%c0, %c0_1] : memref<8x4xf32, #tpu.memory_space<vmem>>, vector<8x4xf32>
    %c0_2 = arith.constant 0 : index
    %c0_3 = arith.constant 0 : index
    %4 = vector.load %arg2[%c0_2, %c0_3] : memref<8x32xf32, #tpu.memory_space<vmem>>, vector<8x32xf32>
    %c0_4 = arith.constant 0 : index
    %c0_5 = arith.constant 0 : index
    %5 = vector.load %arg3[%c0_4, %c0_5] : memref<32x4xf32, #tpu.memory_space<vmem>>, vector<32x4xf32>
    %cst = arith.constant dense<0.000000e+00> : vector<8x4xf32>
    %6 = tpu.matmul %4, %5, %cst {dimension_numbers = #tpu.dot_dimension_numbers<[1], [0], [0], [1], [0, 0, 1, 1], [], []>} : vector<8x32xf32>, vector<32x4xf32>, vector<8x4xf32> -> vector<8x4xf32>
    %7 = arith.addf %3, %6 : vector<8x4xf32>
    %c0_6 = arith.constant 0 : index
    %c0_7 = arith.constant 0 : index
    %8 = vector.load %arg6[%c0_6, %c0_7] : memref<8x4xf32, #tpu.memory_space<vmem>>, vector<8x4xf32>
    tpu.vector_store %arg6[%c0_6, %c0_7], %7 {strides = array<i32>} : memref<8x4xf32, #tpu.memory_space<vmem>>, vector<8x4xf32>,
    %c0_i32_8 = arith.constant 0 : i32
    %9 = arith.cmpi eq, %arg1, %c0_i32_8 : i32
    %10 = arith.extui %9 : i1 to i32
    %c0_i32_9 = arith.constant 0 : i32
    %11 = arith.cmpi ne, %10, %c0_i32_9 : i32
    scf.if %11 {
      %c0_10 = arith.constant 0 : index
      %c0_11 = arith.constant 0 : index
      %12 = vector.load %arg6[%c0_10, %c0_11] : memref<8x4xf32, #tpu.memory_space<vmem>>, vector<8x4xf32>
      %cst_12 = arith.constant 2.000000e+00 : f32
      %13 = vector.broadcast %cst_12 : f32 to vector<8x4xf32>
      %14 = arith.mulf %13, %12 : vector<8x4xf32>
      %c0_13 = arith.constant 0 : index
      %c0_14 = arith.constant 0 : index
      %15 = vector.load %arg4[%c0_13, %c0_14] : memref<4x32xf32, #tpu.memory_space<vmem>>, vector<4x32xf32>
      %cst_15 = arith.constant dense<0.000000e+00> : vector<8x32xf32>
      %16 = tpu.matmul %14, %15, %cst_15 {dimension_numbers = #tpu.dot_dimension_numbers<[1], [0], [0], [1], [0, 0, 1, 1], [], []>} : vector<8x4xf32>, vector<4x32xf32>, vector<8x32xf32> -> vector<8x32xf32>
      %c0_16 = arith.constant 0 : index
      %c0_17 = arith.constant 0 : index
      %17 = vector.load %arg5[%c0_16, %c0_17] : memref<8x32xf32, #tpu.memory_space<vmem>>, vector<8x32xf32>
      tpu.vector_store %arg5[%c0_16, %c0_17], %16 {strides = array<i32>} : memref<8x32xf32, #tpu.memory_space<vmem>>, vector<8x32xf32>,
    } else {
    }
    return
  }
  func.func @transform_0(%arg0: i32, %arg1: i32) -> (i32, i32) {
    %c0_i32 = arith.constant 0 : i32
    return %arg0, %arg1 : i32, i32
  }
  func.func @transform_1(%arg0: i32, %arg1: i32) -> (i32, i32) {
    %c0_i32 = arith.constant 0 : i32
    %c0_i32_0 = arith.constant 0 : i32
    return %arg1, %c0_i32 : i32, i32
  }
  func.func @transform_2(%arg0: i32, %arg1: i32) -> (i32, i32) {
    %c0_i32 = arith.constant 0 : i32
    %c0_i32_0 = arith.constant 0 : i32
    %c0_i32_1 = arith.constant 0 : i32
    return %c0_i32, %c0_i32_0 : i32, i32
  }
  func.func @transform_3(%arg0: i32, %arg1: i32) -> (i32, i32) {
    %c0_i32 = arith.constant 0 : i32
    %c0_i32_0 = arith.constant 0 : i32
    return %arg0, %c0_i32 : i32, i32
  }
}

</mosaic_0001>

<bundles_post_ra>
// kernel: tpu_custom_call.1
= control target key start
LH: loop header
LB: loop body
LE: loop exit
PB: predicated region body
PF: predicated region fallthrough
CT: control target
= control target key end

     0   :  { %8 = vsyncpa [#allocation4], 0  ;;  %s821_s0 = inlined_call_operand.vmem [shape: f32[16,32], index: 0, kind: input, shape index: {}]   ;;  %s822_s1 = inlined_call_operand.vmem [shape: f32[32,4], index: 1, kind: input, shape index: {}]   ;;  %s823_s2 = inlined_call_operand.vmem [shape: f32[4,32], index: 2, kind: input, shape index: {}]   ;;  %s824_s3 = inlined_call_operand.hbm [shape: f32[16,32], index: 3, kind: output, shape index: {}]  }
   0x1   :  { %10 = vsyncpa [#allocation4 + $0x1], 0  ;;  %s689_s12 = smov 0   ;;  %s691_s13 = smov 0  }
   0x2   :  { %s693_s14 = smov 0   ;;  %s695_s15 = smov 0  }
   0x3   :  { %s697_s16 = smov 0   ;;  %s699_s17 = smov 0  }
   0x4 LB: > { %s483_s18 = sadd.s32 4294967295, %s663_s17   ;;  %s484_s19 = sadd.s32 4294967294, %s663_s17   ;;  %s663_s17 = sphi %s699_s17, %s16_s17   ;;  %s659_s16 = sphi %s697_s16, %s831_s16   ;;  %s655_s15 = sphi %s695_s15, %s830_s15   ;;  %s651_s14 = sphi %s693_s14, %s829_s14   ;;  %s647_s13 = sphi %s691_s13, %s828_s13   ;;  %s643_s12 = sphi %s689_s12, %s827_s12  }
   0x5   : > { %s28_s20 = sadd.s32 1, %s659_s16  ;;  %s110_s21 = sadd.s32 1, %s651_s14 }
   0x6   : > { %p30_p0 = scmp.ge.s32.totalorder %s28_s20, 2  ;;  %p120_p1 = scmp.ne.s32.totalorder %s651_s14, %s647_s13 }
   0x7   : > { %p121_p2 = scmp.eq.s32.totalorder %s483_s18, 1  ;;  %p126_p3 = scmp.ne.s32.totalorder %s647_s13, %s643_s12 }
   0x8   : > { %s833_s20 = smov (%p30_p0, %s28_s20), 0  ;;  %p127_p5 = scmp.eq.s32.totalorder %s484_s19, 1 }
   0x9   : > { %p729_p4 = por %p121_p2, %p120_p1  ;;  %s107_s23 = ssub.s32 %s659_s16, %s833_s20 }
   0xa   : > { %p488_p6 = scmp.ge.s32.totalorder %s663_s17, 1  ;;  %p108_p7 = scmp.eq.s32.totalorder %s107_s23, 0 }
   0xb   : > { %p736_p8 = por %p127_p5, %p126_p3  ;;  %p167_p9 = scmp.lt.s32.totalorder %s663_s17, 3 }
   0xc   : > { %s742_s25 = scalar_select %p108_p7, %s651_s14, %s110_s21  }
   0xd   : > { %p168_p10 = pnand %p488_p6, %p167_p9 }
   0xe   : > { %v219_v0 = vld [vmem:[%s822_s1] sm:$0xff] (!%p168_p10)  ;;  %v220_v1 = vld [vmem:[%s822_s1 + $0x8] sm:$0xff] (!%p168_p10)  ;;  %v221_v2 = vld [vmem:[%s822_s1 + $0x10] sm:$0xff] (!%p168_p10)  ;;  %v665_v3 = vmov (!%p168_p10), 0.0|0.0   ;;  %vm666_vm0 = vmmov (!%p168_p10), 0   ;;  %v667_v6 = vmov (!%p168_p10), 0.0  }
   0xf   : > { %171 = sbr.rel (%p168_p10) target bundleno = 477 (0x1dd), region = 32  ;;  %521 = vmatprep.subr.bf16.mxu0 (!%p168_p10), %v665_v3  ;;  %v522_v4 = vpack.c.bf16 (!%p168_p10), %v220_v1, %v219_v0  ;;  %v222_v5 = vld [vmem:[%s822_s1 + $0x18] sm:$0xff] (!%p168_p10)  ;;  %513 = vmatprep.mubr.msk.f32.mxu0 (!%p168_p10), %vm666_vm0, %v667_v6  ;;  %p198_p11 = scmp.lt.s32.totalorder (!%p168_p10), %s655_s15, 1  ;;  %vm215_vm1 = vcmask (!%p168_p10), 31744   ;;  %vm223_vm2 = vcmask (!%p168_p10), 261120   ;;  %vm309_vm3 = vcmask (!%p168_p10), 1043456  }
  0x10   : > { %216 = vst.msk [vmem:[#allocation2] sm:$0xff] (!%p168_p10), %vm215_vm1, %v667_v6  ;;  %516 = vmatprep.subr.mxu1 (!%p168_p10), %v667_v6  ;;  %518 = vmatprep.mubr.msk.f32.mxu1 (!%p168_p10), %vm666_vm0, %v667_v6  ;;  %v525_v7 = vpack.c.bf16 (!%p168_p10), %v222_v5, %v221_v2  ;;  %v305_v9 = vld [vmem:[%s823_s2] sm:$0xf] (!%p168_p10)  ;;  %s195_s21 = sand.u32 (!%p168_p10), 1, %s647_s13   ;;  %s495_s26 = sshll.u32 (!%p168_p10), %s655_s15, 7 }
  0x11   : > { %523 = vmatpush3.bf16.msra.mxu0 (!%p168_p10), %v522_v4  ;;  %517 = vmatpush3.msk.msra.mxu1 (!%p168_p10), %vm309_vm3, %v305_v9  ;;  %s489_s23 = sshll.u32 (!%p168_p10), %s195_s21, 3  ;;  %s773_s4 = scalar_lea.hbm (!%p168_p10), %s824_s3, %s495_s26 }
  0x12   : > { %524 = vmatprep.subr.bf16.mxu0 (!%p168_p10), %v665_v3  ;;  %s197_s27 = scalar_lea.vmem (!%p168_p10), [#allocation3], %s489_s23  ;;  %s385_s5 = scalar_lea.sflag (!%p168_p10), [#allocation4], %s195_s21 }
  0x13   : > { %s398_s28 = sshll.u32 (!%p168_p10), %s197_s27, 4  ;;  %s775_s28 = int_to_ptr.vmem [resolvable:$true] %s398_s28 }
  0x14   : > { %s585_s6 = scalar_lea.vmem (!%p168_p10), %s775_s28, 128 }
  0x15   : > { %526 = vmatpush3.bf16.msra.mxu0 (!%p168_p10), %v525_v7  ;;  %p586_p12 = scmp.ne.s32.totalorder (!%p168_p10), %s775_s28, %s585_s6 }
  0x16   : > { %s199_s7 = scalar_select %p198_p11, %s655_s15, 1 }
  0x17   : > { %v217_v10 = vld [vmem:[#allocation2] sm:$0xff]  ;;  %p587_p13 = pnand %p586_p12, %p729_p4  ;;  %s668_s15 = smov [#allocation3]  }
  0x18   : > { %s490_s8 = sshll.u32 %s199_s7, 3  ;;  %s589_s7 = sshll.u32 %s668_s15, 4  ;;  %s590_s7 = int_to_ptr.vmem [resolvable:$false] %s589_s7 }
  0x19   : > { %s204_s11 = scalar_lea.vmem %s821_s0, %s490_s8  ;;  %p588_p0 = pneg %p587_p13 }
  0x1a   : > { %v218_v8 = vld [vmem:[%s204_s11] sm:$0xff]  ;;  %s591_s8 = scalar_lea.vmem %s590_s7, 256  ;;  %p592_p1 = scmp.lt.s32.totalorder %s775_s28, %s590_s7 }
  0x1b   : > { %514 = vmatmul.mubr.msk.f32.vlgmr.msra.gmra.mrb[0].mxu0 %vm223_vm2, %v218_v8  ;;  %p593_p2 = scmp.lt.s32.totalorder %s591_s8, %s585_s6 }
  0x1d   : > { %p594_p3 = por %p593_p2, %p592_p1 }
  0x1f   : > { %p595_p5 = pnand %p594_p3, %p588_p0 }
  0xee   : > { %v293_v11 = vpop.f32.mrb[0].mxu0 }
  0xef   : > { %v297_v12 = vadd.f32 %v293_v11, %v217_v10  ;;  %v515_v13 = vpop.f32.mrb[1].mxu0 }
  0xf1   : > { %299 = vst.msk [vmem:[#allocation2] sm:$0xff] %vm215_vm1, %v297_v12 }
  0xf8   : > { %v303_v14 = vld [vmem:[#allocation2] sm:$0xff] }
  0xf9   : > { %v304_v15 = vmul.f32 2.0, %v303_v14 }
  0xfb   : > { %519 = vmatmul.mubr.msk.f32.vlgmr.msra.gmra.mrb[0].mxu1 %vm215_vm1, %v304_v15 }
 0x1ce   : > { %v379_v16 = vpop.f32.mrb[0].mxu1 }
 0x1cf   : > { %383 = vst.msk [vmem:[%s197_s27] sm:$0xff] %vm223_vm2, %v379_v16  ;;  %v520_v17 = vpop.f32.mrb[1].mxu1 }
 0x1d0   : > { %598 = shalt.err (!%p595_p5)
}
 0x1d1   : > { %s599_s9 = scalar_lea.hbm %s773_s4, 128  ;;  %s603_s18 = scalar_lea.hbm %s824_s3, 256 }
 0x1d2   : > { %p600_p6 = scmp.ne.s32.totalorder %s773_s4, %s599_s9  ;;  %p604_p10 = scmp.lt.u32.totalorder %s773_s4, %s824_s3 }
 0x1d3   : > { %p605_p11 = scmp.lt.u32.totalorder %s603_s18, %s599_s9  ;;  %p607_p13 = scmp.lt.u32.totalorder %s599_s9, %s773_s4 }
 0x1d4   : > { %p601_p7 = pnand %p600_p6, %p729_p4 }
 0x1d5   : > { %p606_p12 = por %p605_p11, %p604_p10 }
 0x1d6   : > { %p602_p9 = pneg %p601_p7 }
 0x1d7   : > { %p608_p0 = por %p607_p13, %p606_p12 }
 0x1d9   : > { %p609_p1 = pnand %p608_p0, %p602_p9 }
 0x1db   : > { %612 = shalt.err (!%p609_p1)
}
 0x1dc   : > { %527 = dma.vmem_to_hbm [thread:$0]  (%p729_p4), %s775_s28, 128, %s773_s4, %s385_s5  }
 0x1dd PF: > { %p533_p2 = scmp.ge.s32.totalorder %s663_s17, 2  ;;  %s410_s23 = sand.u32 1, %s643_s12  }
 0x1de   : > { %s411_s26 = scalar_lea.sflag [#allocation4], %s410_s23 }
 0x1df   : > { %p530_p3 = pnand %p533_p2, %p736_p8 }
 0x1e1   : > { %638 = dma.done.wait (!%p530_p3), %s411_s26, 128  }
 0x1e2   : > { %640 = vsyncadd (!%p530_p3), %s411_s26, 4294967168  ;;  %s16_s17 = sadd.s32 1, %s663_s17   ;;  %s827_s12 = smov %s647_s13 }
 0x1e3   : > { %p13_p5 = scmp.ge.s32.totalorder %s16_s17, 4   ;;  %s828_s13 = smov %s651_s14 }
 0x1e4   : > { %s829_s14 = smov %s742_s25  ;;  %s830_s15 = smov %s659_s16 }
 0x1e5   : > { %s831_s16 = smov %s833_s20  ;;  %15 = sbr.rel (!%p13_p5) target bundleno = 4 (0x4), region = 78 }
 0x1ec   :  { %416 = vsyncpa [#allocation4], 1 }
 0x1ed   :  { %418 = vsyncpa [#allocation4 + $0x1], 1 }

</bundles_post_ra>
